<compile_context>
chip_gen: v5e
topology: v5e:2x2
jax: 0.10.0
libtpu: 0.0.40
codegen_flags: <defaults>
</compile_context>

<pallas_src>
import math

import jax
import jax.numpy as jnp
from jax import lax
from jax.experimental import pallas as pl
from jax.experimental.pallas import tpu as pltpu

_LOG_SQRT_2PI = 0.5 * math.log(2.0 * math.pi)


def _round_up(n, m):
    return ((n + m - 1) // m) * m


# ---------------------------------------------------------------------------
# Shared per-tile math (batch on lanes, no wrapper transpose).
#   x_tile : (TB, num_inputs)  -- one batch tile, natural layout
#   w1     : (hidden, num_inputs)   (native nn.Linear layout)
#   p      : (hidden, 2)            packed [b1 | linear2 weight column]
#   b2     : scalar (from SMEM)
# returns mu : (1, TB) float32 -- lane-dense row of linear2 outputs.
# ---------------------------------------------------------------------------
def _mlp_tile(x_tile, w1, p, b2_scalar):
    # Contract the K axis of both operands -> (hidden, TB): batch stays on the
    # lane axis without any HBM-side transpose of the state tensor.
    h = lax.dot_general(
        w1, x_tile, (((1,), (1,)), ((), ())),
        preferred_element_type=jnp.float32)                      # MXU: (H, TB)
    b1_col = p[:, 0:1]                                           # (H, 1)
    w2_col = p[:, 1:2]                                           # (H, 1)
    h = jnp.tanh(h + b1_col)                                     # VPU add + EUP tanh
    mu = jnp.sum(h * w2_col, axis=0, keepdims=True) + b2_scalar  # VPU mul + XLU reduce
    return mu                                                    # (1, TB) f32


def policy_forward_kernel(x_ref, w1_ref, p_ref, b2_ref, o_ref):
    mu = _mlp_tile(x_ref[...], w1_ref[...], p_ref[...], b2_ref[0])
    o_ref[...] = mu.astype(o_ref.dtype)


def policy_sample_kernel(x_ref, w1_ref, p_ref, b2_ref, z_ref, act_ref, logp_ref):
    mu = _mlp_tile(x_ref[...], w1_ref[...], p_ref[...], b2_ref[0])
    z = z_ref[...]                                   # standard normal, (1, TB)
    # sig == 1, action - mu == z exactly -> logp = -z^2/2 - log(sqrt(2*pi)).
    act_ref[...] = (mu + z).astype(act_ref.dtype)
    logp_ref[...] = (-0.5 * z * z - _LOG_SQRT_2PI).astype(logp_ref.dtype)


# ---------------------------------------------------------------------------
# Wrappers
# ---------------------------------------------------------------------------
def _prep_params(b1, w2):
    hidden = b1.shape[0]
    return jnp.stack(
        [b1.astype(jnp.float32), w2.reshape(hidden).astype(jnp.float32)], axis=1
    )  # (hidden, 2): col 0 = b1, col 1 = linear2 weight column


def _tile_and_grid(B, block_b):
    assert block_b % 128 == 0, "block_b must be a multiple of 128"
    bb = max(128, min(block_b, _round_up(B, 128)))
    return bb, (pl.cdiv(B, bb),)


def policy_forward(state, w1, b1, w2, b2, *, block_b=4096, compute_dtype=None):
    """Batched forward pass: state (B, num_inputs) -> (B, 1) f32.

    Same math as the nn.Module: linear2(tanh(linear1(state))).
    block_b: batch tile (multiple of 128, clamped to the rounded-up batch).
    compute_dtype: optional jnp.bfloat16 for the state/w1 MXU path on ANY
    generation (v5e included -- accumulation stays f32; self-test tolerances
    assume the default f32 path, bf16 gives ~1e-2 relative mu precision).
    """
    B, num_inputs = state.shape
    hidden = w1.shape[0]
    bb, grid = _tile_and_grid(B, block_b)

    params = _prep_params(b1, w2)                       # (hidden, 2)
    b2_smem = jnp.asarray(b2, jnp.float32).reshape(1)
    x_in, w1_in = state, w1
    if compute_dtype is not None:
        x_in = x_in.astype(compute_dtype)
        w1_in = w1_in.astype(compute_dtype)

    cost = pl.CostEstimate(
        flops=2 * B * hidden * (num_inputs + 1),
        transcendentals=B * hidden,
        bytes_accessed=(x_in.size * x_in.dtype.itemsize
                        + w1_in.size * w1_in.dtype.itemsize
                        + params.size * 4 + 4 + B * 4),
    )

    out_t = pl.pallas_call(
        policy_forward_kernel,
        out_shape=jax.ShapeDtypeStruct((1, B), jnp.float32),
        grid=grid,
        in_specs=[
            pl.BlockSpec((bb, num_inputs), lambda i: (i, 0)),      # streamed batch tile
            pl.BlockSpec((hidden, num_inputs), lambda i: (0, 0)),  # VMEM-resident weights
            pl.BlockSpec((hidden, 2), lambda i: (0, 0)),           # packed [b1 | w2]
            pl.BlockSpec(memory_space=pltpu.MemorySpace.SMEM),     # scalar bias b2
        ],
        out_specs=pl.BlockSpec((1, bb), lambda i: (0, i)),         # lane-dense output
        compiler_params=pltpu.CompilerParams(
            dimension_semantics=("parallel",),                     # megacore / v7x 2-TC
        ),
        cost_estimate=cost,
    )(x_in, w1_in, params, b2_smem)
    return out_t[0, :].reshape(B, 1)


def policy_get_actions(state, w1, b1, w2, b2, key, *, block_b=4096,
                       compute_dtype=None):
    """Fused batched get_action: returns (action (B,), log_prob (B,)).

    action ~ N(mu(state), 1), log_prob is the exact Gaussian(mu, 1) log-density
    of the emitted action. mu itself is not emitted (it equals policy_forward).
    """
    B, num_inputs = state.shape
    hidden = w1.shape[0]
    bb, grid = _tile_and_grid(B, block_b)

    params = _prep_params(b1, w2)
    b2_smem = jnp.asarray(b2, jnp.float32).reshape(1)
    z = jax.random.normal(key, (1, B), jnp.float32)     # lane-dense N(0,1) noise
    x_in, w1_in = state, w1
    if compute_dtype is not None:
        x_in = x_in.astype(compute_dtype)
        w1_in = w1_in.astype(compute_dtype)

    cost = pl.CostEstimate(
        flops=2 * B * hidden * (num_inputs + 1) + 4 * B,
        transcendentals=B * hidden,
        bytes_accessed=(x_in.size * x_in.dtype.itemsize
                        + w1_in.size * w1_in.dtype.itemsize
                        + params.size * 4 + 4 + z.size * 4 + 2 * B * 4),
    )

    lane_spec = pl.BlockSpec((1, bb), lambda i: (0, i))
    act_t, logp_t = pl.pallas_call(
        policy_sample_kernel,
        out_shape=(
            jax.ShapeDtypeStruct((1, B), jnp.float32),
            jax.ShapeDtypeStruct((1, B), jnp.float32),
        ),
        grid=grid,
        in_specs=[
            pl.BlockSpec((bb, num_inputs), lambda i: (i, 0)),
            pl.BlockSpec((hidden, num_inputs), lambda i: (0, 0)),
            pl.BlockSpec((hidden, 2), lambda i: (0, 0)),
            pl.BlockSpec(memory_space=pltpu.MemorySpace.SMEM),
            lane_spec,                                             # noise z
        ],
        out_specs=(lane_spec, lane_spec),
        compiler_params=pltpu.CompilerParams(
            dimension_semantics=("parallel",),
        ),
        cost_estimate=cost,
    )(x_in, w1_in, params, b2_smem, z)
    return act_t[0, :], logp_t[0, :]


def init_params(key, num_inputs, hidden_size):
    """nn.Linear-style init (uniform +/- 1/sqrt(fan_in)), native PyTorch layouts."""
    k1, k2, k3, k4 = jax.random.split(key, 4)
    lim1 = 1.0 / math.sqrt(num_inputs)
    lim2 = 1.0 / math.sqrt(hidden_size)
    w1 = jax.random.uniform(k1, (hidden_size, num_inputs), jnp.float32, -lim1, lim1)
    b1 = jax.random.uniform(k2, (hidden_size,), jnp.float32, -lim1, lim1)
    w2 = jax.random.uniform(k3, (1, hidden_size), jnp.float32, -lim2, lim2)
    b2 = jax.random.uniform(k4, (1,), jnp.float32, -lim2, lim2)
    return w1, b1, w2, b2


if __name__ == "__main__":
    key = jax.random.PRNGKey(0)
    num_inputs, hidden_size = 4, 32
    pkey, xkey, x2key, nkey = jax.random.split(key, 4)
    w1, b1, w2, b2 = init_params(pkey, num_inputs, hidden_size)

    def ref_forward(s):
        return jnp.tanh(s @ w1.T + b1) @ w2.T + b2

    # 1) Small batch (single tile) -- matches the module's typical usage.
    batch = 8
    state = jax.random.normal(xkey, (batch, num_inputs), jnp.float32)
    out = jax.block_until_ready(policy_forward(state, w1, b1, w2, b2))
    assert out.shape == (batch, 1)
    assert jnp.allclose(out, ref_forward(state), atol=1e-5, rtol=1e-5)

    # 2) Batched rollout, B not a multiple of the tile (exercises multi-step
    #    grid + Pallas ragged-edge handling, no wrapper pad/transpose).
    big = 1000
    state_big = jax.random.normal(x2key, (big, num_inputs), jnp.float32)
    out_big = jax.block_until_ready(
        policy_forward(state_big, w1, b1, w2, b2, block_b=256))
    assert out_big.shape == (big, 1)
    assert jnp.allclose(out_big, ref_forward(state_big), atol=1e-5, rtol=1e-5)

    # 3) Fused sampling epilogue: log_prob must be the exact Gaussian(mu, 1)
    #    log-density of the emitted action (mu taken from the forward pass).
    action, log_prob = policy_get_actions(
        state_big, w1, b1, w2, b2, nkey, block_b=256)
    action, log_prob = jax.block_until_ready((action, log_prob))
    assert action.shape == (big,) and log_prob.shape == (big,)
    expected_logp = -0.5 * (action - out_big[:, 0]) ** 2 - _LOG_SQRT_2PI
    assert jnp.allclose(log_prob, expected_logp, atol=1e-4, rtol=1e-4)
    assert bool(jnp.all(jnp.isfinite(action))) and bool(jnp.all(jnp.isfinite(log_prob)))

    print("KERNEL_OK")
</pallas_src>

<mosaic_0001>
module attributes {stable_mosaic.version = 11 : i64} {
  func.func @policy_forward_kernel(%arg0: i32, %arg1: memref<128x4xf32, #tpu.memory_space<vmem>>, %arg2: memref<32x4xf32, #tpu.memory_space<vmem>>, %arg3: memref<32x2xf32, #tpu.memory_space<vmem>>, %arg4: memref<1xf32, #tpu.memory_space<smem>>, %arg5: memref<1x128xf32, #tpu.memory_space<vmem>>) attributes {dimension_semantics = [#tpu.dimension_semantics<parallel>], iteration_bounds = array<i64: 1>, scalar_prefetch = 0 : i64, scratch_operands = 0 : i64, tpu.core_type = #tpu.core_type<tc>, window_params = [{transform_indices = @transform_0, window_bounds = array<i64: 128, 4>}, {pipeline_mode = #tpu.pipeline_mode<synchronous>, transform_indices = @transform_1, window_bounds = array<i64: 32, 4>}, {pipeline_mode = #tpu.pipeline_mode<synchronous>, transform_indices = @transform_2, window_bounds = array<i64: 32, 2>}, {transform_indices = @transform_3, window_bounds = array<i64: 1>}, {transform_indices = @transform_4, window_bounds = array<i64: 1, 128>}]} {
    %c0 = arith.constant 0 : index
    %c0_0 = arith.constant 0 : index
    %0 = vector.load %arg1[%c0, %c0_0] : memref<128x4xf32, #tpu.memory_space<vmem>>, vector<128x4xf32>
    %c0_1 = arith.constant 0 : index
    %c0_2 = arith.constant 0 : index
    %1 = vector.load %arg2[%c0_1, %c0_2] : memref<32x4xf32, #tpu.memory_space<vmem>>, vector<32x4xf32>
    %c0_3 = arith.constant 0 : index
    %c0_4 = arith.constant 0 : index
    %2 = vector.load %arg3[%c0_3, %c0_4] : memref<32x2xf32, #tpu.memory_space<vmem>>, vector<32x2xf32>
    %c0_5 = arith.constant 0 : index
    %3 = memref.load %arg4[%c0_5] : memref<1xf32, #tpu.memory_space<smem>>
    %cst = arith.constant dense<0.000000e+00> : vector<32x128xf32>
    %4 = tpu.matmul %1, %0, %cst {dimension_numbers = #tpu.dot_dimension_numbers<[1], [1], [0], [0], [0, 0, 1, 0], [], []>} : vector<32x4xf32>, vector<128x4xf32>, vector<32x128xf32> -> vector<32x128xf32>
    %5 = vector.extract_strided_slice %2 {offsets = [0, 0], sizes = [32, 1], strides = [1, 1]} : vector<32x2xf32> to vector<32x1xf32>
    %6 = vector.extract_strided_slice %2 {offsets = [0, 1], sizes = [32, 1], strides = [1, 1]} : vector<32x2xf32> to vector<32x1xf32>
    %7 = vector.broadcast %5 : vector<32x1xf32> to vector<32x128xf32>
    %8 = arith.addf %4, %7 : vector<32x128xf32>
    %9 = math.tanh %8 : vector<32x128xf32>
    %10 = vector.broadcast %6 : vector<32x1xf32> to vector<32x128xf32>
    %11 = arith.mulf %9, %10 : vector<32x128xf32>
    %cst_6 = arith.constant dense<0.000000e+00> : vector<128xf32>
    %12 = vector.multi_reduction <add>, %11, %cst_6 [0] : vector<32x128xf32> to vector<128xf32>
    %13 = vector.shape_cast %12 : vector<128xf32> to vector<1x128xf32>
    %14 = vector.broadcast %3 : f32 to vector<1x128xf32>
    %15 = arith.addf %13, %14 : vector<1x128xf32>
    %c0_7 = arith.constant 0 : index
    %c0_8 = arith.constant 0 : index
    %16 = vector.load %arg5[%c0_7, %c0_8] : memref<1x128xf32, #tpu.memory_space<vmem>>, vector<1x128xf32>
    tpu.vector_store %arg5[%c0_7, %c0_8], %15 {strides = array<i32>} : memref<1x128xf32, #tpu.memory_space<vmem>>, vector<1x128xf32>,
    return
  }
  func.func @transform_0(%arg0: i32) -> (i32, i32) {
    %c0_i32 = arith.constant 0 : i32
    %c0_i32_0 = arith.constant 0 : i32
    return %arg0, %c0_i32 : i32, i32
  }
  func.func @transform_1(%arg0: i32) -> (i32, i32) {
    %c0_i32 = arith.constant 0 : i32
    %c0_i32_0 = arith.constant 0 : i32
    %c0_i32_1 = arith.constant 0 : i32
    return %c0_i32, %c0_i32_0 : i32, i32
  }
  func.func @transform_2(%arg0: i32) -> (i32, i32) {
    %c0_i32 = arith.constant 0 : i32
    %c0_i32_0 = arith.constant 0 : i32
    %c0_i32_1 = arith.constant 0 : i32
    return %c0_i32, %c0_i32_0 : i32, i32
  }
  func.func @transform_3(%arg0: i32) -> i32 {
    %c0_i32 = arith.constant 0 : i32
    %c0_i32_0 = arith.constant 0 : i32
    return %c0_i32 : i32
  }
  func.func @transform_4(%arg0: i32) -> (i32, i32) {
    %c0_i32 = arith.constant 0 : i32
    %c0_i32_0 = arith.constant 0 : i32
    return %c0_i32, %arg0 : i32, i32
  }
}

</mosaic_0001>

<bundles_post_ra>
// kernel: tpu_custom_call.1
= control target key start
LH: loop header
LB: loop body
LE: loop exit
PB: predicated region body
PF: predicated region fallthrough
CT: control target
= control target key end

     0   :  { %vm64_vm0 = vcmask 31744   ;;  %s490_s0 = inlined_call_operand.vmem [shape: f32[8,4], index: 0, kind: input, shape index: {}]   ;;  %s491_s1 = inlined_call_operand.vmem [shape: f32[32,4], index: 1, kind: input, shape index: {}]   ;;  %s492_s2 = inlined_call_operand.vmem [shape: f32[32,2], index: 2, kind: input, shape index: {}]   ;;  %s493_s3 = inlined_call_operand.<no memory space> [shape: f32[1], index: 3, kind: input, shape index: {}]   ;;  %s494_s4 = inlined_call_operand.hbm [shape: f32[1,8], index: 4, kind: output, shape index: {}]  }
   0x1   :  { %v34_v0 = vld [vmem:[%s490_s0 + $0x78] sm:$0xff]  ;;  %v33_v1 = vld [vmem:[%s490_s0 + $0x70] sm:$0xff] }
   0x2   :  { %206 = vmatpush.xpose.msk.msra.mxu0 %vm64_vm0, %v34_v0  ;;  %226 = vmatpush.xpose.msk.msra.mxu1 %vm64_vm0, %v34_v0 }
   0x3   :  { %227 = vmatpush.xpose.msk.msra.mxu2 %vm64_vm0, %v34_v0  ;;  %228 = vmatpush.xpose.msk.msra.mxu3 %vm64_vm0, %v34_v0 }
   0x4   :  { %10 = vsyncpa [#allocation4], 0  ;;  %v32_v2 = vld [vmem:[%s490_s0 + $0x68] sm:$0xff]  ;;  %v31_v3 = vld [vmem:[%s490_s0 + $0x60] sm:$0xff]  ;;  %v316_v10 = vmov 0   ;;  %v317_v13 = vmov 1   ;;  %v187_v58 = vstv %s493_s3 }
   0x5   :  { %v30_v4 = vld [vmem:[%s490_s0 + $0x58] sm:$0xff]  ;;  %v29_v5 = vld [vmem:[%s490_s0 + $0x50] sm:$0xff]  ;;  %v28_v6 = vld [vmem:[%s490_s0 + $0x48] sm:$0xff]  ;;  %277 = vset.pattern.permute.xlu0 %v316_v10  ;;  %278 = vset.pattern.permute.xlu1 %v316_v10  ;;  %s318_s10 = smov [#allocation3]   ;;  %s197_s14 = sshll.u32 %s494_s4, 4  ;;  %s198_s14 = int_to_ptr.hbm [resolvable:$true] %s197_s14 }
   0x6   :  { %207 = vmatpush.xpose.msk.msra.mxu0 %vm64_vm0, %v33_v1  ;;  %229 = vmatpush.xpose.msk.msra.mxu1 %vm64_vm0, %v33_v1  ;;  %v27_v7 = vld [vmem:[%s490_s0 + $0x40] sm:$0xff]  ;;  %v26_v8 = vld [vmem:[%s490_s0 + $0x38] sm:$0xff]  ;;  %v41_v11 = vld [vmem:[%s492_s2 + $0x10] sm:$0xff]  ;;  %s195_s11 = sshll.u32 %s318_s10, 4  ;;  %s196_s11 = int_to_ptr.vmem [resolvable:$true] %s195_s11 }
   0x7   :  { %230 = vmatpush.xpose.msk.msra.mxu2 %vm64_vm0, %v33_v1  ;;  %231 = vmatpush.xpose.msk.msra.mxu3 %vm64_vm0, %v33_v1  ;;  %v39_v9 = vld [vmem:[%s492_s2] sm:$0xff]  ;;  %v25_v12 = vld [vmem:[%s490_s0 + $0x30] sm:$0xff]  ;;  %v40_v14 = vld [vmem:[%s492_s2 + $0x8] sm:$0xff] }
   0x8   :  { %46 = vperm.xlu0 %277, %v39_v9   ;;  %56 = vperm.xlu1 %278, %v41_v11   ;;  %v24_v15 = vld [vmem:[%s490_s0 + $0x28] sm:$0xff]  ;;  %v42_v16 = vld [vmem:[%s492_s2 + $0x18] sm:$0xff]  ;;  %v23_v17 = vld [vmem:[%s490_s0 + $0x20] sm:$0xff] }
   0x9   :  { %279 = vset.pattern.permute.xlu2 %v317_v13  ;;  %v22_v18 = vld [vmem:[%s490_s0 + $0x18] sm:$0xff]  ;;  %v21_v19 = vld [vmem:[%s490_s0 + $0x10] sm:$0xff]  ;;  %v20_v20 = vld [vmem:[%s490_s0 + $0x8] sm:$0xff] }
   0xa   :  { %208 = vmatpush.xpose.msk.msra.mxu0 %vm64_vm0, %v32_v2  ;;  %232 = vmatpush.xpose.msk.msra.mxu1 %vm64_vm0, %v32_v2  ;;  %v19_v21 = vld [vmem:[%s490_s0] sm:$0xff]  ;;  %v36_v23 = vld [vmem:[%s491_s1 + $0x8] sm:$0xff]  ;;  %v37_v24 = vld [vmem:[%s491_s1 + $0x10] sm:$0xff] }
   0xb   :  { %233 = vmatpush.xpose.msk.msra.mxu2 %vm64_vm0, %v32_v2  ;;  %234 = vmatpush.xpose.msk.msra.mxu3 %vm64_vm0, %v32_v2  ;;  %v35_v22 = vld [vmem:[%s491_s1] sm:$0xff]  ;;  %v38_v25 = vld [vmem:[%s491_s1 + $0x18] sm:$0xff] }
   0xc   :  { %159 = vperm.xlu2 %279, %v39_v9  }
   0xe   :  { %209 = vmatpush.xpose.msk.msra.mxu0 %vm64_vm0, %v31_v3  ;;  %235 = vmatpush.xpose.msk.msra.mxu1 %vm64_vm0, %v31_v3 }
   0xf   :  { %236 = vmatpush.xpose.msk.msra.mxu2 %vm64_vm0, %v31_v3  ;;  %237 = vmatpush.xpose.msk.msra.mxu3 %vm64_vm0, %v31_v3 }
  0x10   :  { %51 = vperm.xlu0 %277, %v40_v14   ;;  %61 = vperm.xlu1 %278, %v42_v16  }
  0x12   :  { %210 = vmatpush.xpose.msk.msra.mxu0 %vm64_vm0, %v30_v4  ;;  %238 = vmatpush.xpose.msk.msra.mxu1 %vm64_vm0, %v30_v4 }
  0x13   :  { %239 = vmatpush.xpose.msk.msra.mxu2 %vm64_vm0, %v30_v4  ;;  %240 = vmatpush.xpose.msk.msra.mxu3 %vm64_vm0, %v30_v4 }
  0x14   :  { %163 = vperm.xlu2 %279, %v40_v14  }
  0x16   :  { %211 = vmatpush.xpose.msk.msra.mxu0 %vm64_vm0, %v29_v5  ;;  %241 = vmatpush.xpose.msk.msra.mxu1 %vm64_vm0, %v29_v5 }
  0x17   :  { %242 = vmatpush.xpose.msk.msra.mxu2 %vm64_vm0, %v29_v5  ;;  %243 = vmatpush.xpose.msk.msra.mxu3 %vm64_vm0, %v29_v5 }
  0x18   :  { %280 = vset.pattern.permute.xlu0 %v317_v13  ;;  %281 = vset.pattern.permute.xlu1 %v317_v13 }
  0x19   :  { %167 = vperm.xlu0 %280, %v41_v11   ;;  %171 = vperm.xlu1 %281, %v42_v16  }
  0x1a   :  { %212 = vmatpush.xpose.msk.msra.mxu0 %vm64_vm0, %v28_v6  ;;  %244 = vmatpush.xpose.msk.msra.mxu1 %vm64_vm0, %v28_v6 }
  0x1b   :  { %245 = vmatpush.xpose.msk.msra.mxu2 %vm64_vm0, %v28_v6  ;;  %246 = vmatpush.xpose.msk.msra.mxu3 %vm64_vm0, %v28_v6 }
  0x1e   :  { %213 = vmatpush.xpose.msk.msra.mxu0 %vm64_vm0, %v27_v7  ;;  %247 = vmatpush.xpose.msk.msra.mxu1 %vm64_vm0, %v27_v7 }
  0x1f   :  { %248 = vmatpush.xpose.msk.msra.mxu2 %vm64_vm0, %v27_v7  ;;  %249 = vmatpush.xpose.msk.msra.mxu3 %vm64_vm0, %v27_v7 }
  0x22   :  { %214 = vmatpush.xpose.msk.msra.mxu0 %vm64_vm0, %v26_v8  ;;  %250 = vmatpush.xpose.msk.msra.mxu1 %vm64_vm0, %v26_v8 }
  0x23   :  { %251 = vmatpush.xpose.msk.msra.mxu2 %vm64_vm0, %v26_v8  ;;  %252 = vmatpush.xpose.msk.msra.mxu3 %vm64_vm0, %v26_v8 }
  0x26   :  { %215 = vmatpush.xpose.msk.msra.mxu0 %vm64_vm0, %v25_v12  ;;  %253 = vmatpush.xpose.msk.msra.mxu1 %vm64_vm0, %v25_v12 }
  0x27   :  { %254 = vmatpush.xpose.msk.msra.mxu2 %vm64_vm0, %v25_v12  ;;  %255 = vmatpush.xpose.msk.msra.mxu3 %vm64_vm0, %v25_v12 }
  0x2a   :  { %216 = vmatpush.xpose.msk.msra.mxu0 %vm64_vm0, %v24_v15  ;;  %256 = vmatpush.xpose.msk.msra.mxu1 %vm64_vm0, %v24_v15 }
  0x2b   :  { %257 = vmatpush.xpose.msk.msra.mxu2 %vm64_vm0, %v24_v15  ;;  %258 = vmatpush.xpose.msk.msra.mxu3 %vm64_vm0, %v24_v15 }
  0x2e   :  { %217 = vmatpush.xpose.msk.msra.mxu0 %vm64_vm0, %v23_v17  ;;  %259 = vmatpush.xpose.msk.msra.mxu1 %vm64_vm0, %v23_v17 }
  0x2f   :  { %260 = vmatpush.xpose.msk.msra.mxu2 %vm64_vm0, %v23_v17  ;;  %261 = vmatpush.xpose.msk.msra.mxu3 %vm64_vm0, %v23_v17 }
  0x32   :  { %218 = vmatpush.xpose.msk.msra.mxu0 %vm64_vm0, %v22_v18  ;;  %262 = vmatpush.xpose.msk.msra.mxu1 %vm64_vm0, %v22_v18 }
  0x33   :  { %263 = vmatpush.xpose.msk.msra.mxu2 %vm64_vm0, %v22_v18  ;;  %264 = vmatpush.xpose.msk.msra.mxu3 %vm64_vm0, %v22_v18 }
  0x36   :  { %219 = vmatpush.xpose.msk.msra.mxu0 %vm64_vm0, %v21_v19  ;;  %265 = vmatpush.xpose.msk.msra.mxu1 %vm64_vm0, %v21_v19 }
  0x37   :  { %266 = vmatpush.xpose.msk.msra.mxu2 %vm64_vm0, %v21_v19  ;;  %267 = vmatpush.xpose.msk.msra.mxu3 %vm64_vm0, %v21_v19 }
  0x3a   :  { %220 = vmatpush.xpose.msk.msra.mxu0 %vm64_vm0, %v20_v20  ;;  %268 = vmatpush.xpose.msk.msra.mxu1 %vm64_vm0, %v20_v20 }
  0x3b   :  { %269 = vmatpush.xpose.msk.msra.mxu2 %vm64_vm0, %v20_v20  ;;  %270 = vmatpush.xpose.msk.msra.mxu3 %vm64_vm0, %v20_v20 }
  0x3e   :  { %221 = vmatpush.xpose.msk.msra.mxu0 %vm64_vm0, %v19_v21  ;;  %271 = vmatpush.xpose.msk.msra.mxu1 %vm64_vm0, %v19_v21 }
  0x3f   :  { %272 = vmatpush.xpose.msk.msra.mxu2 %vm64_vm0, %v19_v21  ;;  %273 = vmatpush.xpose.msk.msra.mxu3 %vm64_vm0, %v19_v21 }
  0x41   :  { %222 = vmatmul.msk.f32.vlgmr.msra.gmra.mxu0 %vm64_vm0, %v35_v22  ;;  %223 = vmatmul.msk.f32.vlgmr.msra.gmra.mxu1 %vm64_vm0, %v36_v23 }
  0x42   :  { %224 = vmatmul.msk.f32.vlgmr.msra.gmra.mxu2 %vm64_vm0, %v37_v24  ;;  %225 = vmatmul.msk.f32.vlgmr.msra.gmra.mxu3 %vm64_vm0, %v38_v25 }
  0x66   :  { %v160_v33 = vpop.permute.xlu2 %159 }
  0x6e   :  { %v164_v41 = vpop.permute.xlu2 %163 }
  0x7a   :  { %v47_v26 = vpop.permute.xlu0 %46  ;;  %v57_v27 = vpop.permute.xlu1 %56 }
  0x82   :  { %v52_v28 = vpop.permute.xlu0 %51  ;;  %v62_v34 = vpop.permute.xlu1 %61 }
  0x8b   :  { %v168_v44 = vpop.permute.xlu0 %167  ;;  %v172_v46 = vpop.permute.xlu1 %171 }
  0xbe   :  { %v142_v29 = vpop.f32.mrf.mxu0  ;;  %v145_v30 = vpop.f32.mrf.mxu1 }
  0xbf   :  { %v143_v31 = vadd.f32 %v142_v29, %v47_v26  ;;  %v146_v32 = vadd.f32 %v145_v30, %v52_v28 }
  0xc1   :  { %282 = vtanh.f32 %v143_v31 }
  0xc2   :  { %284 = vtanh.f32 %v146_v32 }
  0xc5   :  { %v148_v35 = vpop.f32.mrf.mxu2  ;;  %v151_v36 = vpop.f32.mrf.mxu3 }
  0xc6   :  { %v149_v37 = vadd.f32 %v148_v35, %v57_v27  ;;  %v152_v38 = vadd.f32 %v151_v36, %v62_v34 }
  0xc7   :  { %v283_v39 = vpop.eup %282 }
  0xc8   :  { %v285_v40 = vpop.eup %284  ;;  %286 = vtanh.f32 %v149_v37  ;;  %v174_v42 = vmul.f32 %v283_v39, %v160_v33 }
  0xc9   :  { %288 = vtanh.f32 %v152_v38  ;;  %v175_v43 = vmul.f32 %v285_v40, %v164_v41 }
  0xcb   :  { %v178_v48 = vadd.f32 %v175_v43, %v174_v42 }
  0xce   :  { %v287_v45 = vpop.eup %286 }
  0xcf   :  { %v289_v47 = vpop.eup %288  ;;  %v176_v49 = vmul.f32 %v287_v45, %v168_v44 }
  0xd0   :  { %v177_v50 = vmul.f32 %v289_v47, %v172_v46 }
  0xd1   :  { %v179_v51 = vadd.f32 %v178_v48, %v176_v49 }
  0xd3   :  { %v180_v52 = vadd.f32 %v179_v51, %v177_v50 }
  0xd5   :  { %v181_v53 = vrot.slane %v180_v52, 4 }
  0xd7   :  { %v182_v54 = vadd.f32 %v181_v53, %v180_v52 }
  0xd9   :  { %v183_v55 = vrot.slane %v182_v54, 2 }
  0xdb   :  { %v184_v56 = vadd.f32 %v183_v55, %v182_v54 }
  0xdd   :  { %v185_v57 = vrot.slane %v184_v56, 1 }
  0xdf   :  { %v186_v59 = vadd.f32 %v185_v57, %v184_v56 }
  0xe1   :  { %v188_v60 = vadd.f32 %v187_v58, %v186_v59 }
  0xe3   :  { %189 = vst [vmem:[#allocation3] sm:$0x1] %v188_v60 }
  0xe4   :  { %200 = dma.vmem_to_hbm [thread:$0]  %s196_s11, 16, %s198_s14, [#allocation4]  }
  0xe5   :  { %314 = dma.done.wait [#allocation4], 16  }
  0xe6   :  { %315 = vsyncadd [#allocation4], 4294967280 }
  0xe7   :  { %205 = vsyncpa [#allocation4], 1 }

</bundles_post_ra>
